<compile_context>
chip_gen: v7x
topology: tpu7x:2x2x1
jax: 0.10.0
libtpu: 0.0.40
codegen_flags: <defaults>
</compile_context>

<pallas_src>
import functools
import math

import jax
import jax.numpy as jnp
from jax.experimental import pallas as pl
from jax.experimental.pallas import tpu as pltpu


_LANE_CANDIDATES = (8192, 4096, 2048, 1024, 512, 256, 128)


def _lambda_kernel(x_ref, o_ref, *, lambd):
    # Elementwise hot path: apply the layer's lambda to the VMEM tile.
    o_ref[...] = lambd(x_ref[...]).astype(o_ref.dtype)


def _sublane_base(itemsize):
    # f32 -> 8 sublanes, bf16 -> 16, int8/fp8 -> 32 (sub-32-bit packs along sublanes).
    return max(8, 8 * (4 // max(1, itemsize)))


def _vmem_capacity_bytes():
    try:
        info = pltpu.get_tpu_info()
        cap = getattr(info, "vmem_capacity_bytes", None)
        if cap:
            return int(cap)
    except Exception:
        pass
    return 64 * 1024 * 1024  # conservative default (v7x-sized VMEM)


def _num_tensorcores():
    """Best-effort TensorCore count per device (2 on v7x/v4/v5p, 1 on v5e/v6e)."""
    try:
        dev = jax.devices()[0]
        nc = getattr(dev, "num_cores", None)
        if isinstance(nc, int) and nc > 0:
            return nc
        kind = str(getattr(dev, "device_kind", "")).lower()
        if "lite" in kind or "v5e" in kind or "v6e" in kind or "v6 lite" in kind:
            return 1
        if "v7" in kind or "v4" in kind or "v5p" in kind or "v5" in kind:
            return 2
    except Exception:
        pass
    return 1


def _plan_tiling(total, in_itemsize, out_itemsize, per_buffer_cap, min_steps):
    """Joint (lane, row_tile) search.

    Returns (lane, rows, row_tile, grid_len, tile_bytes) maximizing tile bytes
    (with tiles capped at per_buffer_cap and, on multi-TC chips, a grid of at
    least `min_steps` when the data allows it), or None if no lane-dense
    factorization exists.
    """
    base = max(_sublane_base(in_itemsize), _sublane_base(out_itemsize))
    item = max(in_itemsize, out_itemsize)
    best = None  # (tile_bytes, lane, rows, row_tile, grid_len)
    for lane in _LANE_CANDIDATES:
        if total % lane:
            continue
        rows = total // lane
        if rows % base == 0:
            q = rows // base
            max_d = max(1, per_buffer_cap // (lane * item * base))
            if min_steps > 1 and q >= min_steps:
                # keep >= min_steps grid steps so each TensorCore gets a few
                # steps of steady-state double-buffer overlap.
                max_d = max(1, min(max_d, q // min_steps))
            max_d = min(max_d, q)
            d = 1
            for cand in range(max_d, 0, -1):
                if q % cand == 0:
                    d = cand
                    break
            row_tile = d * base
            grid_len = q // d
        else:
            # Ragged sublane count: only legal as one full-array block.
            if rows * lane * item > per_buffer_cap:
                continue
            row_tile, grid_len = rows, 1
        tile_bytes = row_tile * lane * item
        if best is None or tile_bytes > best[0]:
            best = (tile_bytes, lane, rows, row_tile, grid_len)
    if best is None:
        return None
    tile_bytes, lane, rows, row_tile, grid_len = best
    return lane, rows, row_tile, grid_len, tile_bytes


class PallasLambdaLayer:
    """JAX/Pallas equivalent of the PyTorch LambdaLayer.

    `lambd` must be a JAX-traceable callable.  The Pallas path is only used
    when `lambd` is shape-preserving AND `assume_elementwise=True`; otherwise
    the wrapper simply returns lambd(x) (plain XLA), which is always correct.
    """

    def __init__(self, lambd, *, min_pallas_bytes=8 << 20, assume_elementwise=True):
        self.lambd = lambd
        self.min_pallas_bytes = min_pallas_bytes
        # TODO(synk): there is no generic way to verify elementwise-ness of an
        # arbitrary callable; a shape-preserving but non-elementwise lambd
        # (mean-subtract, softmax, roll, ...) must set assume_elementwise=False
        # to stay on the XLA path.
        self.assume_elementwise = assume_elementwise

    def _call_kernel(self, x2d, out_dtype, row_tile, lane, grid_len, vmem_cap):
        in_tile = row_tile * lane * jnp.dtype(x2d.dtype).itemsize
        out_tile = row_tile * lane * jnp.dtype(out_dtype).itemsize
        # in + out, double-buffered, plus a little headroom for Mosaic scratch.
        need = 2 * (in_tile + out_tile) + (2 << 20)
        vmem_limit = int(min(int(vmem_cap * 0.75), max(need, 4 << 20)))
        kernel = functools.partial(_lambda_kernel, lambd=self.lambd)
        return pl.pallas_call(
            kernel,
            out_shape=jax.ShapeDtypeStruct(x2d.shape, out_dtype),
            grid=(grid_len,),
            in_specs=[pl.BlockSpec((row_tile, lane), lambda i: (i, 0))],
            out_specs=pl.BlockSpec((row_tile, lane), lambda i: (i, 0)),
            compiler_params=pltpu.CompilerParams(
                dimension_semantics=("parallel",),
                vmem_limit_bytes=vmem_limit,
            ),
        )(x2d)

    def __call__(self, x):
        lambd = self.lambd
        orig_shape = tuple(x.shape)
        in_itemsize = jnp.dtype(x.dtype).itemsize
        total = math.prod(orig_shape) if orig_shape else 1

        if not self.assume_elementwise:
            return lambd(x)

        # Derive output dtype and verify the lambda is shape-preserving
        # without running it.
        try:
            out_aval = jax.eval_shape(
                lambd, jax.ShapeDtypeStruct(orig_shape, x.dtype))
            shape_preserving = getattr(out_aval, "shape", None) == orig_shape
        except Exception:
            shape_preserving = False
        if not shape_preserving:
            # TODO(synk): shape-changing lambdas (e.g. strided-slice + pad
            # shortcuts) need bespoke BlockSpecs; fall back to plain XLA.
            return lambd(x)
        out_dtype = out_aval.dtype
        out_itemsize = jnp.dtype(out_dtype).itemsize

        # Tiny inputs: pallas_call is a fusion barrier and its fixed overhead
        # dwarfs the op; XLA fuses elementwise ops at roofline.
        if total == 0 or total * max(in_itemsize, out_itemsize) < self.min_pallas_bytes:
            return lambd(x)

        vmem_cap = _vmem_capacity_bytes()
        # 1-4 MiB tiles already hit ~85% of HBM roofline; bigger buys nothing.
        per_buffer_cap = min(vmem_cap // 8, 4 << 20)
        min_steps = 8 if _num_tensorcores() >= 2 else 1

        plan = _plan_tiling(total, in_itemsize, out_itemsize,
                            per_buffer_cap, min_steps)
        if plan is None:
            # Element count not 128-divisible: padding would double HBM
            # traffic for a mem-bound op, so let XLA run the fused op instead.
            return lambd(x)
        lane, rows, row_tile, grid_len, tile_bytes = plan

        # Degenerate factorization (rows = base*prime, etc.): thousands of
        # sub-512KiB steps run well below roofline; XLA is strictly better.
        if grid_len > 8 and tile_bytes < (per_buffer_cap // 8):
            return lambd(x)

        x2d = jnp.reshape(jnp.reshape(x, (-1,)), (rows, lane))
        y2d = self._call_kernel(x2d, out_dtype, row_tile, lane, grid_len,
                                vmem_cap)
        return jnp.reshape(y2d, orig_shape)


if __name__ == "__main__":
    # Deterministic example lambda (what the PyTorch module would be
    # constructed with): a simple elementwise affine map.
    lambd = lambda t: 2.0 * t + 1.0

    key = jax.random.PRNGKey(0)

    # 1) Required small NCHW example (2, 4, 16, 16); force the Pallas path so
    #    the kernel itself is exercised at this size (single-block grid).
    layer = PallasLambdaLayer(lambd, min_pallas_bytes=0)
    x = jax.random.normal(key, (2, 4, 16, 16), dtype=jnp.float32)
    y = jax.block_until_ready(layer(x))
    y_ref = lambd(x)
    assert y.shape == x.shape
    assert y.dtype == y_ref.dtype
    assert jnp.allclose(y, y_ref, atol=1e-6, rtol=1e-6)

    # 2) Larger input (4 MiB): lane-dense multi-/single-block pipelined path.
    layer_forced = PallasLambdaLayer(lambd, min_pallas_bytes=0)
    x_big = jax.random.normal(jax.random.PRNGKey(1), (8, 8, 256, 128),
                              dtype=jnp.float32)
    y_big = jax.block_until_ready(layer_forced(x_big))
    assert jnp.allclose(y_big, lambd(x_big), atol=1e-6, rtol=1e-6)

    # 3) Dtype-narrowing lambda: exercises max(in,out) dtype-aware tiling.
    lambd_cast = lambda t: (t * 0.5).astype(jnp.bfloat16)
    layer_cast = PallasLambdaLayer(lambd_cast, min_pallas_bytes=0)
    y_cast = jax.block_until_ready(layer_cast(x_big))
    assert y_cast.dtype == jnp.bfloat16
    assert jnp.allclose(y_cast.astype(jnp.float32),
                        lambd_cast(x_big).astype(jnp.float32),
                        atol=1e-2, rtol=1e-2)

    # 4) Awkward element count (not a multiple of 128): clean XLA fallback.
    x_odd = jax.random.normal(jax.random.PRNGKey(2), (3, 5, 7, 11),
                              dtype=jnp.float32)
    layer_odd = PallasLambdaLayer(lambd, min_pallas_bytes=0)
    y_odd = jax.block_until_ready(layer_odd(x_odd))
    assert jnp.allclose(y_odd, lambd(x_odd), atol=1e-6, rtol=1e-6)

    # 5) Tiny input through the default fast path (no pallas_call / no
    #    fusion barrier).
    layer_default = PallasLambdaLayer(lambd)
    x_tiny = jax.random.normal(jax.random.PRNGKey(3), (2, 4, 16, 16),
                               dtype=jnp.float32)
    y_tiny = jax.block_until_ready(layer_default(x_tiny))
    assert jnp.allclose(y_tiny, lambd(x_tiny), atol=1e-6, rtol=1e-6)

    print("KERNEL_OK")
</pallas_src>

<mosaic_0001>
module attributes {stable_mosaic.version = 11 : i64} {
  func.func @_lambda_kernel(%arg0: i32, %arg1: memref<1x2048xf32, #tpu.memory_space<vmem>>, %arg2: memref<1x2048xf32, #tpu.memory_space<vmem>>) attributes {dimension_semantics = [#tpu.dimension_semantics<parallel>], iteration_bounds = array<i64: 1>, scalar_prefetch = 0 : i64, scratch_operands = 0 : i64, tpu.core_type = #tpu.core_type<tc>, window_params = [{transform_indices = @transform_0, window_bounds = array<i64: 1, 2048>}, {transform_indices = @transform_1, window_bounds = array<i64: 1, 2048>}]} {
    %c0 = arith.constant 0 : index
    %c0_0 = arith.constant 0 : index
    %0 = vector.load %arg1[%c0, %c0_0] : memref<1x2048xf32, #tpu.memory_space<vmem>>, vector<1x2048xf32>
    %cst = arith.constant 2.000000e+00 : f32
    %1 = vector.broadcast %cst : f32 to vector<1x2048xf32>
    %2 = arith.mulf %1, %0 : vector<1x2048xf32>
    %cst_1 = arith.constant 1.000000e+00 : f32
    %3 = vector.broadcast %cst_1 : f32 to vector<1x2048xf32>
    %4 = arith.addf %2, %3 : vector<1x2048xf32>
    %c0_2 = arith.constant 0 : index
    %c0_3 = arith.constant 0 : index
    %5 = vector.load %arg2[%c0_2, %c0_3] : memref<1x2048xf32, #tpu.memory_space<vmem>>, vector<1x2048xf32>
    tpu.vector_store %arg2[%c0_2, %c0_3], %4 {strides = array<i32>} : memref<1x2048xf32, #tpu.memory_space<vmem>>, vector<1x2048xf32>,
    return
  }
  func.func @transform_0(%arg0: i32) -> (i32, i32) {
    %c0_i32 = arith.constant 0 : i32
    %c0_i32_0 = arith.constant 0 : i32
    return %arg0, %c0_i32 : i32, i32
  }
  func.func @transform_1(%arg0: i32) -> (i32, i32) {
    %c0_i32 = arith.constant 0 : i32
    %c0_i32_0 = arith.constant 0 : i32
    return %arg0, %c0_i32 : i32, i32
  }
}

</mosaic_0001>

<bundles_post_ra>
// kernel: tpu_custom_call.1
= control target key start
LH: loop header
LB: loop body
LE: loop exit
PB: predicated region body
PF: predicated region fallthrough
CT: control target
= control target key end

     0   :  { %6 = vsyncpa [#allocation3], 0  ;;  %s130_s0 = inlined_call_operand.hbm [shape: f32[1,2048], index: 0, kind: input, shape index: {}]   ;;  %s131_s1 = inlined_call_operand.hbm [shape: f32[1,2048], index: 1, kind: output, shape index: {}]  }
   0x1   :  { %7 = vsyncpa [#allocation4], 0  ;;  %s94_s6 = smov [#allocation2]   ;;  %s46_s10 = scalar_lea.hbm %s130_s0, 256 }
   0x2   :  { %s14_s7 = sshll.u32 %s94_s6, 4  ;;  %p47_p0 = scmp.ne.s32.totalorder %s130_s0, %s46_s10  ;;  %s15_s7 = int_to_ptr.vmem [resolvable:$true] %s14_s7 }
   0x3   :  { %p50_p1 = scmp.lt.u32.totalorder %s46_s10, %s130_s0 }
   0x5   :  { %p52_p2 = pnand %p50_p1, %p47_p0 }
   0x7   :  { %55 = shalt.err (!%p52_p2)
}
   0x8   :  { %s56_s15 = scalar_lea.vmem %s15_s7, 256  ;;  %p61_p4 = scmp.lt.s32.totalorder %s15_s7, %s15_s7 }
   0x9   :  { %p57_p3 = scmp.ne.s32.totalorder %s15_s7, %s56_s15  ;;  %p62_p5 = scmp.lt.s32.totalorder %s56_s15, %s56_s15 }
   0xb   :  { %p63_p6 = por %p62_p5, %p61_p4 }
   0xd   :  { %p64_p7 = pnand %p63_p6, %p57_p3 }
   0xf   :  { %67 = shalt.err (!%p64_p7)
}
  0x10   :  { %17 = dma.hbm_to_vmem [thread:$0]  %s130_s0, 256, %s15_s7, [#allocation3]  }
  0x11   :  { %90 = dma.done.wait [#allocation3], 256  }
  0x12   :  { %91 = vsyncadd [#allocation3], 4294967040  ;;  %v21_v0 = vld [vmem:[#allocation2] sm:$0xff]  ;;  %v22_v1 = vld [vmem:[#allocation2 + $0x8] sm:$0xff]  ;;  %s95_s18 = smov [#allocation5]  }
  0x13   :  { %s35_s19 = sshll.u32 %s95_s18, 4  ;;  %v23_v2 = vmul.f32 2.0, %v21_v0  ;;  %v24_v3 = vmul.f32 2.0, %v22_v1  ;;  %s36_s19 = int_to_ptr.vmem [resolvable:$true] %s35_s19 }
  0x14   :  { %s68_s20 = scalar_lea.vmem %s36_s19, 256  ;;  %p73_p9 = scmp.lt.s32.totalorder %s36_s19, %s36_s19 }
  0x15   :  { %v25_v4 = vadd.f32 1.0, %v23_v2  ;;  %v26_v5 = vadd.f32 1.0, %v24_v3  ;;  %p69_p8 = scmp.ne.s32.totalorder %s36_s19, %s68_s20  ;;  %p74_p10 = scmp.lt.s32.totalorder %s68_s20, %s68_s20 }
  0x17   :  { %27 = vst [vmem:[#allocation5] sm:$0xff] %v25_v4  ;;  %28 = vst [vmem:[#allocation5 + $0x8] sm:$0xff] %v26_v5  ;;  %p75_p11 = por %p74_p10, %p73_p9 }
  0x19   :  { %p76_p12 = pnand %p75_p11, %p69_p8 }
  0x1b   :  { %79 = shalt.err (!%p76_p12)
}
  0x1c   :  { %s80_s22 = scalar_lea.hbm %s131_s1, 256 }
  0x1d   :  { %p81_p13 = scmp.ne.s32.totalorder %s131_s1, %s80_s22  ;;  %p84_p0 = scmp.lt.u32.totalorder %s80_s22, %s131_s1 }
  0x1f   :  { %p86_p1 = pnand %p84_p0, %p81_p13 }
  0x21   :  { %89 = shalt.err (!%p86_p1)
}
  0x22   :  { %38 = dma.vmem_to_hbm [thread:$0]  %s36_s19, 256, %s131_s1, [#allocation4]  }
  0x23   :  { %92 = dma.done.wait [#allocation4], 256  }
  0x24   :  { %93 = vsyncadd [#allocation4], 4294967040 }
  0x25   :  { %42 = vsyncpa [#allocation3], 1 }
  0x26   :  { %43 = vsyncpa [#allocation4], 1 }

</bundles_post_ra>
